<compile_context>
chip_gen: v6e
topology: v6e:2x2x1
jax: 0.10.0
libtpu: 0.0.40
codegen_flags: <defaults>
</compile_context>

<pallas_src>
import jax
import jax.numpy as jnp
from jax import lax
from jax.experimental import pallas as pl
from jax.experimental.pallas import tpu as pltpu

NEG_SLOPE = 0.01   # nn.LeakyReLU() default
BN_EPS = 1e-5      # nn.BatchNorm2d default


def _round_up(x, m):
    return ((x + m - 1) // m) * m


def _make_dense_filter_kernel(*, w_spatial, kh, pad, s_valid, s_pad, lpad,
                              mm_dtype):
    """Kernel closure over static config.

    w_spatial : W (lanes per H row in the flattened layout)
    kh, pad   : conv taps along H and its "same" padding
    s_valid   : H*W (valid lanes); s_pad: lanes after rounding up to 128
    lpad      : lane-aligned write offset of z inside the scratch
    """
    rpad = pad * w_spatial                      # halo width actually read

    def kernel(x_ref, s1_ref, t1_ref, w1_ref, b1_ref, w2_ref, b2_ref,
               o_ref, zp_ref):
        # x_ref : (1, Cin, S_pad)  f32
        # s1/t1 : (Cin, 1)         folded BN1 scale/shift
        # w1    : (C_mid, Cin)     1x1 conv weight with BN2 folded in (mm_dtype)
        # b1    : (C_mid, 1)       1x1 conv bias with BN2 folded in
        # w2    : (kh, growth, C_mid) per-tap (5,1) conv weights (mm_dtype)
        # b2    : (growth, 1)
        # o_ref : (1, Cin+growth, S_pad)
        # zp_ref: (C_mid, lpad + S_pad + rpad) mm_dtype, zero-haloed scratch
        c_mid = w1_ref.shape[0]
        growth = w2_ref.shape[1]

        x = x_ref[0]                                           # (Cin, S_pad) f32

        # BatchNorm2d(Cin) (folded affine) + LeakyReLU (maximum form: 2 VPU ops).
        a = s1_ref[...] * x + t1_ref[...]
        a = jnp.maximum(a, NEG_SLOPE * a)

        # 1x1 Conv + folded BatchNorm2d + LeakyReLU.  MXU with f32 accumulation.
        z = jnp.dot(w1_ref[...], a.astype(mm_dtype),
                    preferred_element_type=jnp.float32) + b1_ref[...]
        z = jnp.maximum(z, NEG_SLOPE * z)

        # Lanes beyond the valid H*W extent must be zero (they would be read as
        # bottom-row halo by the last taps).  Static no-op when S_pad == H*W.
        if s_pad != s_valid:
            lane = lax.broadcasted_iota(jnp.int32, (1, s_pad), 1)
            z = jnp.where(lane < s_valid, z, 0.0)

        # Zero only the two halo strips the tap reads can touch (NOT the whole
        # scratch).  Done every step (not pl.when(pid==0)) because under
        # megacore sharding a core may never execute step 0, and the strips are
        # tiny (pad*W lanes each).
        if rpad:
            strip = jnp.zeros((c_mid, rpad), zp_ref.dtype)
            zp_ref[:, lpad - rpad:lpad] = strip
            zp_ref[:, lpad + s_pad:lpad + s_pad + rpad] = strip

        # Lane-aligned (lpad % 128 == 0, S_pad % 128 == 0) unmasked store of z.
        zp_ref[:, lpad:lpad + s_pad] = z.astype(zp_ref.dtype)

        # (kh,1) "same" conv along H: per-tap accumulating matmuls on
        # lane-shifted views of the scratch (tap j -> input row h - pad + j).
        y = jnp.zeros((growth, s_pad), jnp.float32)
        for j in range(kh):                                    # static unroll
            start = lpad + (j - pad) * w_spatial               # static offset
            tap = zp_ref[:, start:start + s_pad]               # (C_mid, S_pad)
            y = y + jnp.dot(w2_ref[j], tap,
                            preferred_element_type=jnp.float32)
        y = y + b2_ref[...]

        # Dropout2d: eval-mode identity (see TODO at top of file).

        # torch.cat((x, net(x)), dim=1): ONE fused full-sublane, lane-dense store.
        o_ref[0] = jnp.concatenate([x, y], axis=0).astype(o_ref.dtype)

    return kernel


def dense_filter_forward(x,
                         bn1_gamma, bn1_beta, bn1_mean, bn1_var,
                         conv1_w, conv1_b,
                         bn2_gamma, bn2_beta, bn2_mean, bn2_var,
                         conv2_w, conv2_b,
                         *, eps=BN_EPS, mxu_dtype=jnp.bfloat16):
    """Eval-mode forward of _DenseFilter (default dim=-2 config), NCHW in/out."""
    n, cin, h, w = x.shape
    c_mid = conv1_w.shape[0]
    growth, c_mid2, kh, kw = conv2_w.shape
    assert c_mid2 == c_mid and kw == 1, "only the default dim=-2 config is supported"
    pad = kh // 2
    s = h * w
    s_pad = _round_up(s, 128)
    c_tot = cin + growth

    # NCHW -> (N, C, H*W): contiguous collapse (no transpose); pad lanes to 128.
    x2 = x.astype(jnp.float32).reshape(n, cin, s)
    if s_pad != s:
        x2 = jnp.pad(x2, ((0, 0), (0, 0), (0, s_pad - s)))

    # Fold eval-mode BN1 into a per-channel affine.
    s1v = bn1_gamma / jnp.sqrt(bn1_var + eps)
    t1v = bn1_beta - bn1_mean * s1v
    s1 = s1v.astype(jnp.float32).reshape(cin, 1)
    t1 = t1v.astype(jnp.float32).reshape(cin, 1)

    # Fold eval-mode BN2 directly into the 1x1 conv weight/bias.
    s2v = bn2_gamma / jnp.sqrt(bn2_var + eps)
    t2v = bn2_beta - bn2_mean * s2v
    w1f = (s2v[:, None] * conv1_w[:, :, 0, 0]).astype(mxu_dtype)          # (C_mid, Cin)
    b1f = (s2v * conv1_b + t2v).astype(jnp.float32).reshape(c_mid, 1)     # (C_mid, 1)

    # (kh,1) conv weight per tap: (kh, growth, C_mid).
    w2f = jnp.transpose(conv2_w[:, :, :, 0], (2, 0, 1)).astype(mxu_dtype)
    b2f = conv2_b.astype(jnp.float32).reshape(growth, 1)

    # Scratch geometry: lane-aligned left offset, pad*W halo actually read.
    rpad = pad * w
    lpad = _round_up(rpad, 128) if rpad else 0
    zp_width = lpad + s_pad + rpad

    kernel = _make_dense_filter_kernel(w_spatial=w, kh=kh, pad=pad,
                                       s_valid=s, s_pad=s_pad, lpad=lpad,
                                       mm_dtype=mxu_dtype)

    # Explicit VMEM budget (double-buffered in/out blocks + scratch + params),
    # capped well inside every generation's scoped limit.
    mm_item = jnp.dtype(mxu_dtype).itemsize
    in_bytes = cin * s_pad * 4
    out_bytes = c_tot * s_pad * 4
    param_bytes = (2 * cin + c_mid * (cin + 1) + kh * growth * c_mid + growth) * 4
    scratch_bytes = c_mid * zp_width * mm_item
    need = 2 * (in_bytes + out_bytes + param_bytes) + scratch_bytes
    vmem_limit = int(min(32 * 1024 * 1024, max(4 * 1024 * 1024, 2 * need)))

    # Advisory cost estimate (the kernel is HBM-bandwidth bound).
    flops = 2 * n * s_pad * (c_mid * cin + kh * growth * c_mid) \
        + 8 * n * s_pad * (cin + c_mid + growth)
    bytes_accessed = n * (in_bytes + out_bytes) + param_bytes

    out = pl.pallas_call(
        kernel,
        out_shape=jax.ShapeDtypeStruct((n, c_tot, s_pad), jnp.float32),
        grid_spec=pltpu.PrefetchScalarGridSpec(
            num_scalar_prefetch=0,
            grid=(n,),
            in_specs=[
                pl.BlockSpec((1, cin, s_pad), lambda i: (i, 0, 0)),
                pl.BlockSpec((cin, 1), lambda i: (0, 0)),
                pl.BlockSpec((cin, 1), lambda i: (0, 0)),
                pl.BlockSpec((c_mid, cin), lambda i: (0, 0)),
                pl.BlockSpec((c_mid, 1), lambda i: (0, 0)),
                pl.BlockSpec((kh, growth, c_mid), lambda i: (0, 0, 0)),
                pl.BlockSpec((growth, 1), lambda i: (0, 0)),
            ],
            out_specs=pl.BlockSpec((1, c_tot, s_pad), lambda i: (i, 0, 0)),
            scratch_shapes=[pltpu.VMEM((c_mid, zp_width), mxu_dtype)],
        ),
        compiler_params=pltpu.CompilerParams(
            dimension_semantics=("parallel",),
            vmem_limit_bytes=vmem_limit),
        cost_estimate=pl.CostEstimate(flops=int(flops), transcendentals=0,
                                      bytes_accessed=int(bytes_accessed)),
    )(x2, s1, t1, w1f, b1f, w2f, b2f)

    # (N, C, S_pad) -> drop lane padding -> NCHW (free contiguous reshape).
    return out[:, :, :s].reshape(n, c_tot, h, w)


def _reference(x, g1, bb1, m1, v1, w1, cb1, g2, bb2, m2, v2, w2, cb2,
               eps=BN_EPS):
    """Pure-JAX eval-mode reference of _DenseFilter.forward (NCHW)."""
    def bn(t, g, b, m, v):
        return ((t - m[None, :, None, None])
                / jnp.sqrt(v[None, :, None, None] + eps)
                * g[None, :, None, None] + b[None, :, None, None])

    def leaky(t):
        return jnp.where(t > 0, t, NEG_SLOPE * t)

    kh = w2.shape[2]
    pad = kh // 2
    hdd = leaky(bn(x.astype(jnp.float32), g1, bb1, m1, v1))
    hdd = lax.conv_general_dilated(
        hdd, w1.astype(jnp.float32), (1, 1), "VALID",
        dimension_numbers=("NCHW", "OIHW", "NCHW")) + cb1[None, :, None, None]
    hdd = leaky(bn(hdd, g2, bb2, m2, v2))
    hdd = lax.conv_general_dilated(
        hdd, w2.astype(jnp.float32), (1, 1), ((pad, pad), (0, 0)),
        dimension_numbers=("NCHW", "OIHW", "NCHW")) + cb2[None, :, None, None]
    # Dropout2d: eval-mode identity.
    return jnp.concatenate([x.astype(jnp.float32), hdd], axis=1)


if __name__ == "__main__":
    # Module defaults: in_features=4, growth_rate=4, bottleneck=2 -> C_mid=8,
    # filter_len=5; batch=2, spatial 16x16.
    in_features, growth_rate, bottleneck, filter_len = 4, 4, 2, 5
    c_mid = bottleneck * growth_rate
    N, H, W = 2, 16, 16

    keys = jax.random.split(jax.random.PRNGKey(0), 14)
    x = jax.random.normal(keys[0], (N, in_features, H, W), jnp.float32)

    # BatchNorm2d(in_features) params / running stats.
    g1 = 1.0 + 0.1 * jax.random.normal(keys[1], (in_features,), jnp.float32)
    bb1 = 0.1 * jax.random.normal(keys[2], (in_features,), jnp.float32)
    m1 = 0.1 * jax.random.normal(keys[3], (in_features,), jnp.float32)
    v1 = 1.0 + 0.1 * jax.random.uniform(keys[4], (in_features,), jnp.float32)

    # Conv2d(in_features, bottleneck*growth, 1) with bias.
    w1 = 0.2 * jax.random.normal(keys[5], (c_mid, in_features, 1, 1), jnp.float32)
    cb1 = 0.1 * jax.random.normal(keys[6], (c_mid,), jnp.float32)

    # BatchNorm2d(bottleneck*growth) params / running stats.
    g2 = 1.0 + 0.1 * jax.random.normal(keys[7], (c_mid,), jnp.float32)
    bb2 = 0.1 * jax.random.normal(keys[8], (c_mid,), jnp.float32)
    m2 = 0.1 * jax.random.normal(keys[9], (c_mid,), jnp.float32)
    v2 = 1.0 + 0.1 * jax.random.uniform(keys[10], (c_mid,), jnp.float32)

    # Conv2d(bottleneck*growth, growth, (5,1), padding=(2,0)) with bias.
    w2 = 0.2 * jax.random.normal(keys[11], (growth_rate, c_mid, filter_len, 1),
                                 jnp.float32)
    cb2 = 0.1 * jax.random.normal(keys[12], (growth_rate,), jnp.float32)

    args = (x, g1, bb1, m1, v1, w1, cb1, g2, bb2, m2, v2, w2, cb2)
    ref = _reference(*args)

    # 1) f32 MXU path: exact check against the pure-JAX reference.
    out_f32 = jax.block_until_ready(
        dense_filter_forward(*args, mxu_dtype=jnp.float32))
    assert out_f32.shape == (N, in_features + growth_rate, H, W), out_f32.shape
    err_f32 = float(jnp.max(jnp.abs(out_f32 - ref)))
    assert jnp.allclose(out_f32, ref, atol=1e-4, rtol=1e-4), err_f32

    # 2) Default bf16 MXU operands (f32 accumulation): loose tolerance.
    out_bf16 = jax.block_until_ready(dense_filter_forward(*args))
    err_bf16 = float(jnp.max(jnp.abs(out_bf16 - ref)))
    assert err_bf16 < 1e-1, err_bf16

    # 3) Non-multiple-of-128 spatial extent (exercises lane padding + masked
    #    bottom-row halo): H=10, W=12 -> S=120 -> S_pad=128.
    H2, W2 = 10, 12
    x_odd = jax.random.normal(keys[13], (N, in_features, H2, W2), jnp.float32)
    args_odd = (x_odd,) + args[1:]
    out_odd = jax.block_until_ready(
        dense_filter_forward(*args_odd, mxu_dtype=jnp.float32))
    ref_odd = _reference(*args_odd)
    err_odd = float(jnp.max(jnp.abs(out_odd - ref_odd)))
    assert jnp.allclose(out_odd, ref_odd, atol=1e-4, rtol=1e-4), err_odd

    print("KERNEL_OK")
</pallas_src>

<mosaic_0001>
module attributes {stable_mosaic.version = 11 : i64} {
  func.func @kernel(%arg0: i32, %arg1: memref<1x4x256xf32, #tpu.memory_space<vmem>>, %arg2: memref<4x1xf32, #tpu.memory_space<vmem>>, %arg3: memref<4x1xf32, #tpu.memory_space<vmem>>, %arg4: memref<8x4xf32, #tpu.memory_space<vmem>>, %arg5: memref<8x1xf32, #tpu.memory_space<vmem>>, %arg6: memref<5x4x8xf32, #tpu.memory_space<vmem>>, %arg7: memref<4x1xf32, #tpu.memory_space<vmem>>, %arg8: memref<1x8x256xf32, #tpu.memory_space<vmem>>, %arg9: memref<8x416xf32, #tpu.memory_space<vmem>>) attributes {dimension_semantics = [#tpu.dimension_semantics<parallel>], iteration_bounds = array<i64: 2>, scalar_prefetch = 0 : i64, scratch_operands = 1 : i64, tpu.core_type = #tpu.core_type<tc>, window_params = [{transform_indices = @transform_0, window_bounds = array<i64: 1, 4, 256>}, {pipeline_mode = #tpu.pipeline_mode<synchronous>, transform_indices = @transform_1, window_bounds = array<i64: 4, 1>}, {pipeline_mode = #tpu.pipeline_mode<synchronous>, transform_indices = @transform_2, window_bounds = array<i64: 4, 1>}, {pipeline_mode = #tpu.pipeline_mode<synchronous>, transform_indices = @transform_3, window_bounds = array<i64: 8, 4>}, {pipeline_mode = #tpu.pipeline_mode<synchronous>, transform_indices = @transform_4, window_bounds = array<i64: 8, 1>}, {pipeline_mode = #tpu.pipeline_mode<synchronous>, transform_indices = @transform_5, window_bounds = array<i64: 5, 4, 8>}, {pipeline_mode = #tpu.pipeline_mode<synchronous>, transform_indices = @transform_6, window_bounds = array<i64: 4, 1>}, {transform_indices = @transform_7, window_bounds = array<i64: 1, 8, 256>}]} {
    %c0 = arith.constant 0 : index
    %c0_0 = arith.constant 0 : index
    %c0_1 = arith.constant 0 : index
    %0 = vector.load %arg1[%c0, %c0_0, %c0_1] : memref<1x4x256xf32, #tpu.memory_space<vmem>>, vector<1x4x256xf32>
    %1 = vector.shape_cast %0 : vector<1x4x256xf32> to vector<4x256xf32>
    %c0_2 = arith.constant 0 : index
    %c0_3 = arith.constant 0 : index
    %2 = vector.load %arg2[%c0_2, %c0_3] : memref<4x1xf32, #tpu.memory_space<vmem>>, vector<4x1xf32>
    %3 = vector.broadcast %2 : vector<4x1xf32> to vector<4x256xf32>
    %4 = arith.mulf %3, %1 : vector<4x256xf32>
    %c0_4 = arith.constant 0 : index
    %c0_5 = arith.constant 0 : index
    %5 = vector.load %arg3[%c0_4, %c0_5] : memref<4x1xf32, #tpu.memory_space<vmem>>, vector<4x1xf32>
    %6 = vector.broadcast %5 : vector<4x1xf32> to vector<4x256xf32>
    %7 = arith.addf %4, %6 : vector<4x256xf32>
    %cst = arith.constant 0.00999999977 : f32
    %8 = vector.broadcast %cst : f32 to vector<4x256xf32>
    %9 = arith.mulf %8, %7 : vector<4x256xf32>
    %10 = arith.maximumf %7, %9 : vector<4x256xf32>
    %c0_6 = arith.constant 0 : index
    %c0_7 = arith.constant 0 : index
    %11 = vector.load %arg4[%c0_6, %c0_7] : memref<8x4xf32, #tpu.memory_space<vmem>>, vector<8x4xf32>
    %cst_8 = arith.constant dense<0.000000e+00> : vector<8x256xf32>
    %12 = tpu.matmul %11, %10, %cst_8 {dimension_numbers = #tpu.dot_dimension_numbers<[1], [0], [0], [1], [0, 0, 1, 1], [], []>} : vector<8x4xf32>, vector<4x256xf32>, vector<8x256xf32> -> vector<8x256xf32>
    %c0_9 = arith.constant 0 : index
    %c0_10 = arith.constant 0 : index
    %13 = vector.load %arg5[%c0_9, %c0_10] : memref<8x1xf32, #tpu.memory_space<vmem>>, vector<8x1xf32>
    %14 = vector.broadcast %13 : vector<8x1xf32> to vector<8x256xf32>
    %15 = arith.addf %12, %14 : vector<8x256xf32>
    %cst_11 = arith.constant 0.00999999977 : f32
    %16 = vector.broadcast %cst_11 : f32 to vector<8x256xf32>
    %17 = arith.mulf %16, %15 : vector<8x256xf32>
    %18 = arith.maximumf %15, %17 : vector<8x256xf32>
    %cst_12 = arith.constant 0.000000e+00 : f32
    %19 = vector.broadcast %cst_12 : f32 to vector<8x32xf32>
    %c0_13 = arith.constant 0 : index
    %c96 = arith.constant 96 : index
    %20 = vector.load %arg9[%c0_13, %c96] : memref<8x416xf32, #tpu.memory_space<vmem>>, vector<8x32xf32>
    tpu.vector_store %arg9[%c0_13, %c96], %19 {strides = array<i32>} : memref<8x416xf32, #tpu.memory_space<vmem>>, vector<8x32xf32>,
    %c0_14 = arith.constant 0 : index
    %c384 = arith.constant 384 : index
    %21 = vector.load %arg9[%c0_14, %c384] : memref<8x416xf32, #tpu.memory_space<vmem>>, vector<8x32xf32>
    tpu.vector_store %arg9[%c0_14, %c384], %19 {strides = array<i32>} : memref<8x416xf32, #tpu.memory_space<vmem>>, vector<8x32xf32>,
    %c0_15 = arith.constant 0 : index
    %c128 = arith.constant 128 : index
    %22 = vector.load %arg9[%c0_15, %c128] : memref<8x416xf32, #tpu.memory_space<vmem>>, vector<8x256xf32>
    tpu.vector_store %arg9[%c0_15, %c128], %18 {strides = array<i32>} : memref<8x416xf32, #tpu.memory_space<vmem>>, vector<8x256xf32>,
    %cst_16 = arith.constant 0.000000e+00 : f32
    %23 = vector.broadcast %cst_16 : f32 to vector<4x256xf32>
    %c0_17 = arith.constant 0 : index
    %c96_18 = arith.constant 96 : index
    %24 = vector.load %arg9[%c0_17, %c96_18] : memref<8x416xf32, #tpu.memory_space<vmem>>, vector<8x256xf32>
    %c0_19 = arith.constant 0 : index
    %c0_20 = arith.constant 0 : index
    %c0_21 = arith.constant 0 : index
    %25 = vector.load %arg6[%c0_19, %c0_20, %c0_21] : memref<5x4x8xf32, #tpu.memory_space<vmem>>, vector<1x4x8xf32>
    %26 = vector.shape_cast %25 : vector<1x4x8xf32> to vector<4x8xf32>
    %cst_22 = arith.constant dense<0.000000e+00> : vector<4x256xf32>
    %27 = tpu.matmul %26, %24, %cst_22 {dimension_numbers = #tpu.dot_dimension_numbers<[1], [0], [0], [1], [0, 0, 1, 1], [], []>} : vector<4x8xf32>, vector<8x256xf32>, vector<4x256xf32> -> vector<4x256xf32>
    %28 = arith.addf %23, %27 : vector<4x256xf32>
    %c0_23 = arith.constant 0 : index
    %c112 = arith.constant 112 : index
    %29 = vector.load %arg9[%c0_23, %c112] : memref<8x416xf32, #tpu.memory_space<vmem>>, vector<8x256xf32>
    %c1 = arith.constant 1 : index
    %c0_24 = arith.constant 0 : index
    %c0_25 = arith.constant 0 : index
    %30 = vector.load %arg6[%c1, %c0_24, %c0_25] : memref<5x4x8xf32, #tpu.memory_space<vmem>>, vector<1x4x8xf32>
    %31 = vector.shape_cast %30 : vector<1x4x8xf32> to vector<4x8xf32>
    %cst_26 = arith.constant dense<0.000000e+00> : vector<4x256xf32>
    %32 = tpu.matmul %31, %29, %cst_26 {dimension_numbers = #tpu.dot_dimension_numbers<[1], [0], [0], [1], [0, 0, 1, 1], [], []>} : vector<4x8xf32>, vector<8x256xf32>, vector<4x256xf32> -> vector<4x256xf32>
    %33 = arith.addf %28, %32 : vector<4x256xf32>
    %c0_27 = arith.constant 0 : index
    %c128_28 = arith.constant 128 : index
    %34 = vector.load %arg9[%c0_27, %c128_28] : memref<8x416xf32, #tpu.memory_space<vmem>>, vector<8x256xf32>
    %c2 = arith.constant 2 : index
    %c0_29 = arith.constant 0 : index
    %c0_30 = arith.constant 0 : index
    %35 = vector.load %arg6[%c2, %c0_29, %c0_30] : memref<5x4x8xf32, #tpu.memory_space<vmem>>, vector<1x4x8xf32>
    %36 = vector.shape_cast %35 : vector<1x4x8xf32> to vector<4x8xf32>
    %cst_31 = arith.constant dense<0.000000e+00> : vector<4x256xf32>
    %37 = tpu.matmul %36, %34, %cst_31 {dimension_numbers = #tpu.dot_dimension_numbers<[1], [0], [0], [1], [0, 0, 1, 1], [], []>} : vector<4x8xf32>, vector<8x256xf32>, vector<4x256xf32> -> vector<4x256xf32>
    %38 = arith.addf %33, %37 : vector<4x256xf32>
    %c0_32 = arith.constant 0 : index
    %c144 = arith.constant 144 : index
    %39 = vector.load %arg9[%c0_32, %c144] : memref<8x416xf32, #tpu.memory_space<vmem>>, vector<8x256xf32>
    %c3 = arith.constant 3 : index
    %c0_33 = arith.constant 0 : index
    %c0_34 = arith.constant 0 : index
    %40 = vector.load %arg6[%c3, %c0_33, %c0_34] : memref<5x4x8xf32, #tpu.memory_space<vmem>>, vector<1x4x8xf32>
    %41 = vector.shape_cast %40 : vector<1x4x8xf32> to vector<4x8xf32>
    %cst_35 = arith.constant dense<0.000000e+00> : vector<4x256xf32>
    %42 = tpu.matmul %41, %39, %cst_35 {dimension_numbers = #tpu.dot_dimension_numbers<[1], [0], [0], [1], [0, 0, 1, 1], [], []>} : vector<4x8xf32>, vector<8x256xf32>, vector<4x256xf32> -> vector<4x256xf32>
    %43 = arith.addf %38, %42 : vector<4x256xf32>
    %c0_36 = arith.constant 0 : index
    %c160 = arith.constant 160 : index
    %44 = vector.load %arg9[%c0_36, %c160] : memref<8x416xf32, #tpu.memory_space<vmem>>, vector<8x256xf32>
    %c4 = arith.constant 4 : index
    %c0_37 = arith.constant 0 : index
    %c0_38 = arith.constant 0 : index
    %45 = vector.load %arg6[%c4, %c0_37, %c0_38] : memref<5x4x8xf32, #tpu.memory_space<vmem>>, vector<1x4x8xf32>
    %46 = vector.shape_cast %45 : vector<1x4x8xf32> to vector<4x8xf32>
    %cst_39 = arith.constant dense<0.000000e+00> : vector<4x256xf32>
    %47 = tpu.matmul %46, %44, %cst_39 {dimension_numbers = #tpu.dot_dimension_numbers<[1], [0], [0], [1], [0, 0, 1, 1], [], []>} : vector<4x8xf32>, vector<8x256xf32>, vector<4x256xf32> -> vector<4x256xf32>
    %48 = arith.addf %43, %47 : vector<4x256xf32>
    %c0_40 = arith.constant 0 : index
    %c0_41 = arith.constant 0 : index
    %49 = vector.load %arg7[%c0_40, %c0_41] : memref<4x1xf32, #tpu.memory_space<vmem>>, vector<4x1xf32>
    %50 = vector.broadcast %49 : vector<4x1xf32> to vector<4x256xf32>
    %51 = arith.addf %48, %50 : vector<4x256xf32>
    %52 = tpu.concatenate %1, %51 in 0 : vector<4x256xf32>, vector<4x256xf32> -> vector<8x256xf32>
    %c0_42 = arith.constant 0 : index
    %c0_43 = arith.constant 0 : index
    %c0_44 = arith.constant 0 : index
    %53 = vector.load %arg8[%c0_42, %c0_43, %c0_44] : memref<1x8x256xf32, #tpu.memory_space<vmem>>, vector<1x8x256xf32>
    %54 = vector.shape_cast %53 : vector<1x8x256xf32> to vector<8x256xf32>
    %55 = vector.shape_cast %52 : vector<8x256xf32> to vector<1x8x256xf32>
    tpu.vector_store %arg8[%c0_42, %c0_43, %c0_44], %55 {strides = array<i32>} : memref<1x8x256xf32, #tpu.memory_space<vmem>>, vector<1x8x256xf32>,
    return
  }
  func.func @transform_0(%arg0: i32) -> (i32, i32, i32) {
    %c0_i32 = arith.constant 0 : i32
    %c0_i32_0 = arith.constant 0 : i32
    %c0_i32_1 = arith.constant 0 : i32
    return %arg0, %c0_i32, %c0_i32_0 : i32, i32, i32
  }
  func.func @transform_1(%arg0: i32) -> (i32, i32) {
    %c0_i32 = arith.constant 0 : i32
    %c0_i32_0 = arith.constant 0 : i32
    %c0_i32_1 = arith.constant 0 : i32
    return %c0_i32, %c0_i32_0 : i32, i32
  }
  func.func @transform_2(%arg0: i32) -> (i32, i32) {
    %c0_i32 = arith.constant 0 : i32
    %c0_i32_0 = arith.constant 0 : i32
    %c0_i32_1 = arith.constant 0 : i32
    return %c0_i32, %c0_i32_0 : i32, i32
  }
  func.func @transform_3(%arg0: i32) -> (i32, i32) {
    %c0_i32 = arith.constant 0 : i32
    %c0_i32_0 = arith.constant 0 : i32
    %c0_i32_1 = arith.constant 0 : i32
    return %c0_i32, %c0_i32_0 : i32, i32
  }
  func.func @transform_4(%arg0: i32) -> (i32, i32) {
    %c0_i32 = arith.constant 0 : i32
    %c0_i32_0 = arith.constant 0 : i32
    %c0_i32_1 = arith.constant 0 : i32
    return %c0_i32, %c0_i32_0 : i32, i32
  }
  func.func @transform_5(%arg0: i32) -> (i32, i32, i32) {
    %c0_i32 = arith.constant 0 : i32
    %c0_i32_0 = arith.constant 0 : i32
    %c0_i32_1 = arith.constant 0 : i32
    %c0_i32_2 = arith.constant 0 : i32
    return %c0_i32, %c0_i32_0, %c0_i32_1 : i32, i32, i32
  }
  func.func @transform_6(%arg0: i32) -> (i32, i32) {
    %c0_i32 = arith.constant 0 : i32
    %c0_i32_0 = arith.constant 0 : i32
    %c0_i32_1 = arith.constant 0 : i32
    return %c0_i32, %c0_i32_0 : i32, i32
  }
  func.func @transform_7(%arg0: i32) -> (i32, i32, i32) {
    %c0_i32 = arith.constant 0 : i32
    %c0_i32_0 = arith.constant 0 : i32
    %c0_i32_1 = arith.constant 0 : i32
    return %arg0, %c0_i32, %c0_i32_0 : i32, i32, i32
  }
}

</mosaic_0001>

<bundles_post_ra>
// kernel: tpu_custom_call.1
= control target key start
LH: loop header
LB: loop body
LE: loop exit
PB: predicated region body
PF: predicated region fallthrough
CT: control target
= control target key end

     0   :  { %12 = vsyncpa [#allocation4], 0  ;;  %s1269_s0 = inlined_call_operand.vmem [shape: f32[2,4,256], index: 0, kind: input, shape index: {}]   ;;  %s1270_s1 = inlined_call_operand.vmem [shape: f32[4,1], index: 1, kind: input, shape index: {}]   ;;  %s1271_s2 = inlined_call_operand.vmem [shape: f32[4,1], index: 2, kind: input, shape index: {}]   ;;  %s1272_s3 = inlined_call_operand.vmem [shape: f32[8,4], index: 3, kind: input, shape index: {}]   ;;  %s1273_s4 = inlined_call_operand.vmem [shape: f32[8,1], index: 4, kind: input, shape index: {}]   ;;  %s1274_s5 = inlined_call_operand.vmem [shape: f32[5,4,8], index: 5, kind: input, shape index: {}]   ;;  %s1275_s6 = inlined_call_operand.vmem [shape: f32[4,1], index: 6, kind: input, shape index: {}]   ;;  %s1276_s7 = inlined_call_operand.hbm [shape: f32[2,8,256], index: 7, kind: output, shape index: {}]  }
   0x1   :  { %14 = vsyncpa [#allocation4 + $0x1], 0  ;;  %s1116_s24 = smov 0   ;;  %s1118_s25 = smov 0  }
   0x2   :  { %s1120_s26 = smov 0   ;;  %s1122_s27 = smov 0  }
   0x3 LB: > { %s1137_s28 = sadd.s32 4294967295, %s1067_s27   ;;  %s933_s29 = sadd.s32 4294967294, %s1067_s27   ;;  %s1067_s27 = sphi %s1122_s27, %s1282_s27   ;;  %s1063_s26 = sphi %s1120_s26, %s1281_s26   ;;  %s1059_s25 = sphi %s1118_s25, %s1280_s25   ;;  %s1055_s24 = sphi %s1116_s24, %s1279_s24  }
   0x4   : > { %s1141_s30 = sadd.s32 1, %s1067_s27   ;;  %s179_s8 = sadd.s32 1, %s1063_s26 }
   0x5   : > { %s176_s9 = ssub.s32 %s1067_s27, %s1141_s30  ;;  %p189_p0 = scmp.ne.s32.totalorder %s1063_s26, %s1059_s25 }
   0x6   : > { %p177_p1 = scmp.eq.s32.totalorder %s176_s9, 0  ;;  %p190_p2 = scmp.eq.s32.totalorder %s1137_s28, 1 }
   0x7   : > { %p195_p3 = scmp.ne.s32.totalorder %s1059_s25, %s1055_s24  ;;  %p196_p4 = scmp.eq.s32.totalorder %s933_s29, 1 }
   0x8   : > { %s1152_s10 = scalar_select %p177_p1, %s1063_s26, %s179_s8  }
   0x9   : > { %p1154_p5 = por %p190_p2, %p189_p0  ;;  %p1158_p6 = por %p196_p4, %p195_p3 }
   0xa   : > { %p936_p7 = scmp.ge.s32.totalorder %s1067_s27, 1  ;;  %p240_p8 = scmp.lt.s32.totalorder %s1067_s27, 3 }
   0xc   : > { %p241_p9 = pnand %p936_p7, %p240_p8 }
   0xd   : > { %p272_p10 = scmp.lt.s32.totalorder (!%p241_p9), %s1137_s28, 1  ;;  %s1071_s9 = smov (!%p241_p9), 16  }
   0xe   : > { %244 = sbr.rel (%p241_p9) target bundleno = 705 (0x2c1), region = 48  ;;  %s1072_s13 = smov (!%p241_p9), 32  }
   0xf   : > { %s1073_s14 = smov (!%p241_p9), 112   ;;  %s1074_s15 = smov (!%p241_p9), 96  }
  0x10   : > { %s958_s16 = sshll.u32 (!%p241_p9), %s1137_s28, 8 }
  0x11   : > { %s1232_s21 = scalar_lea.hbm (!%p241_p9), %s1276_s7, %s958_s16 }
  0x13   : > { %v278_v0 = vld [vmem:[%s1270_s1] sm:$0xf]  ;;  %v1069_v1 = vmov 0   ;;  %v1070_v3 = vmov 0.0   ;;  %vm394_vm0 = vcmask 1048320   ;;  %vm396_vm1 = vcmask 261120  }
  0x14   : > { %1004 = vset.pattern.permute.xlu0 %v1069_v1  ;;  %1005 = vset.pattern.permute.xlu1 %v1069_v1  ;;  %v289_v2 = vld [vmem:[%s1271_s2] sm:$0xf]  ;;  %395 = vst.msk [vmem:[#allocation2] sm:$0xff] %vm394_vm0, %v1070_v3  ;;  %s273_s19 = scalar_select %p272_p10, %s1137_s28, 1  ;;  %vm312_vm2 = vcmask 1043456   ;;  %vm308_vm3 = vcmask 31744  }
  0x15   : > { %281 = vperm.xlu0 %1004, %v278_v0   ;;  %383 = vmatprep.mubr.f32.mxu0 %v1070_v3  ;;  %397 = vst.msk [vmem:[#allocation2 + $0x18] sm:$0xff] %vm396_vm1, %v1070_v3  ;;  %v302_v4 = vld [vmem:[%s1273_s4] sm:$0xff]  ;;  %vm415_vm4 = vcmask 130048   ;;  %vm420_vm5 = vcmask 64512   ;;  %v946_v43 = vld [vmem:[%s1274_s5 + $0x8] sm:$0xf] }
  0x16   : > { %488 = vmatprep.mubr.f32.mxu1 %v1070_v3  ;;  %305 = vperm.xlu1 %1005, %v302_v4   ;;  %s957_s20 = sshll.u32 %s273_s19, 3  ;;  %v301_v17 = vld [vmem:[%s1272_s3] sm:$0xff]  ;;  %vm671_vm6 = vcmask 916480   ;;  %v948_v49 = vld [vmem:[%s1274_s5 + $0xc] sm:$0xf]  ;;  %vm760_vm7 = vcmask 785408  }
  0x17   : > { %s276_s23 = scalar_lea.vmem %s1269_s0, %s957_s20  ;;  %v841_v29 = vld [vmem:[%s1275_s6] sm:$0xf]  ;;  %v943_v37 = vld [vmem:[%s1274_s5 + $0x4] sm:$0xf]  ;;  %v950_v54 = vld [vmem:[%s1274_s5 + $0x10] sm:$0xf] }
  0x18   : > { %v1183_v5 = vld [vmem:[%s276_s23] sm:$0xff]  ;;  %s1075_s28 = smov [#allocation3]  }
  0x19   : > { %292 = vperm.xlu0 %1004, %v289_v2   ;;  %v1187_v6 = vcombine.high %v1183_v5, %v1183_v5  ;;  %v403_v42 = vld [vmem:[%s1274_s5] sm:$0xf]  ;;  %s1011_s29 = sshll.u32 %s1075_s28, 4  ;;  %s1012_s29 = int_to_ptr.vmem [resolvable:$false] %s1011_s29 }
  0x1a   : > { %s1013_s8 = scalar_lea.vmem %s1012_s29, 512 }
  0x1b   : > { %v400_v18 = vld [vmem:[#allocation2] sm:$0xff] }
  0x1c   : > { %409 = vrot.lane.b32.xlu1 %v400_v18, %s1071_s9  ;;  %v659_v28 = vld [vmem:[#allocation2 + $0x18] sm:$0xff] }
  0x1d   : > { %495 = vrot.lane.b32.xlu0 %v400_v18, %s1072_s13 }
  0x90   : > { %v282_v7 = vpop.permute.xlu0 %281 }
  0x91   : > { %v287_v8 = vmul.f32 %v282_v7, %v1183_v5  ;;  %v288_v9 = vmul.f32 %v1187_v6, %v282_v7  ;;  %v306_v19 = vpop.permute.xlu1 %305 }
  0x94   : > { %v293_v10 = vpop.permute.xlu0 %292 }
  0x95   : > { %v295_v11 = vadd.f32 %v293_v10, %v287_v8  ;;  %v296_v12 = vadd.f32 %v293_v10, %v288_v9  ;;  %v410_v30 = vpop.permute.xlu1 %409 }
  0x97   : > { %v297_v13 = vmul.f32 0.01, %v295_v11  ;;  %v298_v14 = vmul.f32 0.01, %v296_v12 }
  0x98   : > { %v496_v31 = vpop.permute.xlu0 %495 }
  0x99   : > { %v299_v15 = vmax.f32 %v295_v11, %v297_v13  ;;  %v300_v16 = vmax.f32 %v296_v12, %v298_v14 }
  0x9b   : > { %940 = vmatprep.subr.msk.mxu0 %vm312_vm2, %v300_v16 }
  0x9c   : > { %941 = vmatpush1.msk.msra.mxu0 %vm312_vm2, %v299_v15 }
  0x9d   : > { %942 = vmatmul.mubr.msk.f32.vlgmr.msra.gmra.mxu0 %vm308_vm3, %v301_v17 }
  0x9e   : > { %572 = vmatprep.mubr.f32.mxu0 %v1070_v3 }
 0x15d   : > { %v385_v20 = vpop.f32.mrf.mxu0 }
 0x15e   : > { %v386_v21 = vadd.f32 %v385_v20, %v306_v19 }
 0x15f   : > { %v387_v22 = vpop.f32.mrf.mxu0 }
 0x160   : > { %v390_v23 = vmul.f32 0.01, %v386_v21  ;;  %v388_v24 = vadd.f32 %v387_v22, %v306_v19 }
 0x162   : > { %v392_v25 = vmax.f32 %v386_v21, %v390_v23  ;;  %v391_v26 = vmul.f32 0.01, %v388_v24 }
 0x164   : > { %v393_v27 = vmax.f32 %v388_v24, %v391_v26  ;;  %497 = vrot.lane.b32.xlu0 %v392_v25, %s1072_s13  ;;  %411 = vrot.lane.b32.xlu1 %v392_v25, %s1071_s9 }
 0x168   : > { %413 = vrot.lane.b32.xlu0 %v393_v27, %s1071_s9  ;;  %665 = vrot.lane.b32.xlu1 %v392_v25, %s1073_s14 }
 0x16c   : > { %669 = vrot.lane.b32.xlu0 %v659_v28, %s1073_s14  ;;  %499 = vrot.lane.b32.xlu1 %v393_v27, %s1072_s13 }
 0x170   : > { %756 = vrot.lane.b32.xlu0 %v393_v27, %s1074_s15  ;;  %667 = vrot.lane.b32.xlu1 %v393_v27, %s1073_s14  ;;  %s269_s14 = sand.u32 1, %s1059_s25  }
 0x171   : > { %s860_s22 = scalar_lea.sflag [#allocation4], %s269_s14 }
 0x174   : > { %754 = vrot.lane.b32.xlu0 %v392_v25, %s1074_s15  ;;  %758 = vrot.lane.b32.xlu1 %v659_v28, %s1074_s15  ;;  %s937_s15 = sshll.u32 %s269_s14, 4 }
 0x175   : > { %s271_s17 = scalar_lea.vmem [#allocation3], %s937_s15 }
 0x176   : > { %s874_s18 = sshll.u32 %s271_s17, 4  ;;  %s875_s18 = int_to_ptr.vmem [resolvable:$true] %s874_s18 }
 0x177   : > { %s1007_s23 = scalar_lea.vmem %s875_s18, 256  ;;  %p1014_p0 = scmp.lt.s32.totalorder %s875_s18, %s1012_s29 }
 0x178   : > { %844 = vperm.xlu1 %1005, %v841_v29   ;;  %p1008_p11 = scmp.ne.s32.totalorder %s875_s18, %s1007_s23  ;;  %p1015_p1 = scmp.lt.s32.totalorder %s1013_s8, %s1007_s23 }
 0x17a   : > { %p1009_p12 = pnand %p1008_p11, %p1154_p5  ;;  %p1016_p2 = por %p1015_p1, %p1014_p0 }
 0x17c   : > { %p1010_p13 = pneg %p1009_p12 }
 0x17e   : > { %p1017_p3 = pnand %p1016_p2, %p1010_p13 }
 0x1d6   : > { %v498_v32 = vpop.permute.xlu0 %497  ;;  %v412_v33 = vpop.permute.xlu1 %411 }
 0x1d7   : > { %v416_v38 = vsel %vm415_vm4, %v410_v30, %v412_v33  ;;  %v501_v44 = vsel %vm396_vm1, %v496_v31, %v498_v32 }
 0x1da   : > { %v414_v34 = vpop.permute.xlu0 %413  ;;  %v666_v35 = vpop.permute.xlu1 %665 }
 0x1db   : > { %v417_v36 = vsel %vm415_vm4, %v412_v33, %v414_v34 }
 0x1dc   : > { %454 = vmatprep.subr.mxu1 %v417_v36 }
 0x1dd   : > { %455 = vmatpush1.msra.mxu1 %v416_v38 }
 0x1de   : > { %v670_v39 = vpop.permute.xlu0 %669  ;;  %614 = vmatprep.subr.mxu1 %v393_v27  ;;  %v500_v40 = vpop.permute.xlu1 %499  ;;  %944 = vmatmul.mubr.msk.f32.vlgmr.msra.gmra.mxu1 %vm420_vm5, %v943_v37 }
 0x1df   : > { %615 = vmatpush1.msra.mxu1 %v392_v25  ;;  %v502_v41 = vsel %vm396_vm1, %v498_v32, %v500_v40  ;;  %648 = vmatprep.mubr.f32.mxu1 %v1070_v3 }
 0x1e0   : > { %538 = vmatprep.subr.mxu0 %v502_v41 }
 0x1e1   : > { %539 = vmatpush1.msra.mxu0 %v501_v44 }
 0x1e2   : > { %v757_v45 = vpop.permute.xlu0 %756  ;;  %v668_v46 = vpop.permute.xlu1 %667  ;;  %945 = vmatmul.mubr.msk.f32.vlgmr.msra.gmra.mxu0 %vm420_vm5, %v403_v42  ;;  %947 = vmatmul.mubr.msk.f32.vlgmr.msra.gmra.mxu1 %vm420_vm5, %v946_v43 }
 0x1e3   : > { %v672_v47 = vsel %vm671_vm6, %v666_v35, %v668_v46  ;;  %v673_v48 = vsel %vm671_vm6, %v668_v46, %v670_v39  ;;  %743 = vmatprep.mubr.f32.mxu0 %v1070_v3  ;;  %832 = vmatprep.mubr.f32.mxu1 %v1070_v3 }
 0x1e4   : > { %709 = vmatprep.subr.mxu0 %v673_v48 }
 0x1e5   : > { %710 = vmatpush1.msra.mxu0 %v672_v47 }
 0x1e6   : > { %v755_v50 = vpop.permute.xlu0 %754  ;;  %v759_v51 = vpop.permute.xlu1 %758  ;;  %949 = vmatmul.mubr.msk.f32.vlgmr.msra.gmra.mxu0 %vm420_vm5, %v948_v49 }
 0x1e7   : > { %v761_v52 = vsel %vm760_vm7, %v755_v50, %v757_v45  ;;  %v762_v53 = vsel %vm760_vm7, %v757_v45, %v759_v51 }
 0x1e8   : > { %798 = vmatprep.subr.mxu1 %v762_v53 }
 0x1e9   : > { %799 = vmatpush1.msra.mxu1 %v761_v52 }
 0x1ea   : > { %951 = vmatmul.mubr.msk.f32.vlgmr.msra.gmra.mxu1 %vm420_vm5, %v950_v54 }
 0x1f3   : > { %v845_v9 = vpop.permute.xlu1 %844 }
 0x29e   : > { %v490_v55 = vpop.f32.mrf.mxu1 }
 0x2a0   : > { %v492_v56 = vpop.f32.mrf.mxu1 }
 0x2a2   : > { %v574_v57 = vpop.f32.mrf.mxu0  ;;  %v650_v58 = vpop.f32.mrf.mxu1 }
 0x2a3   : > { %v575_v59 = vadd.f32 %v574_v57, %v490_v55 }
 0x2a4   : > { %v576_v60 = vpop.f32.mrf.mxu0  ;;  %v652_v61 = vpop.f32.mrf.mxu1 }
 0x2a5   : > { %v577_v62 = vadd.f32 %v576_v60, %v492_v56  ;;  %v655_v63 = vadd.f32 %v650_v58, %v575_v59 }
 0x2a6   : > { %v745_v0 = vpop.f32.mrf.mxu0 }
 0x2a7   : > { %v656_v1 = vadd.f32 %v652_v61, %v577_v62  ;;  %v750_v3 = vadd.f32 %v745_v0, %v655_v63 }
 0x2a8   : > { %v747_v2 = vpop.f32.mrf.mxu0 }
 0x2a9   : > { %v751_v7 = vadd.f32 %v747_v2, %v656_v1 }
 0x2aa   : > { %v834_v4 = vpop.f32.mrf.mxu1 }
 0x2ab   : > { %v839_v8 = vadd.f32 %v834_v4, %v750_v3 }
 0x2ac   : > { %v836_v10 = vpop.f32.mrf.mxu1 }
 0x2ad   : > { %v847_v11 = vadd.f32 %v845_v9, %v839_v8  ;;  %v840_v12 = vadd.f32 %v836_v10, %v751_v7 }
 0x2af   : > { %v851_v13 = vrot.slane %v847_v11, 4  ;;  %v848_v14 = vadd.f32 %v845_v9, %v840_v12 }
 0x2b1   : > { %v852_v15 = vrot.slane %v848_v14, 4  ;;  %v855_v16 = vsel %vm312_vm2, %v1183_v5, %v851_v13 }
 0x2b2   : > { %857 = vst [vmem:[%s271_s17] sm:$0xff] %v855_v16 }
 0x2b3   : > { %v856_v17 = vsel %vm312_vm2, %v1187_v6, %v852_v15 }
 0x2b4   : > { %858 = vst [vmem:[%s271_s17 + $0x8] sm:$0xff] %v856_v17 }
 0x2b5   : > { %1020 = shalt.err (!%p1017_p3)
}
 0x2b6   : > { %s1021_s9 = scalar_lea.hbm %s1232_s21, 256  ;;  %s1025_s15 = scalar_lea.hbm %s1276_s7, 512 }
 0x2b7   : > { %p1022_p4 = scmp.ne.s32.totalorder %s1232_s21, %s1021_s9  ;;  %p1026_p9 = scmp.lt.s32.totalorder %s1232_s21, %s1276_s7 }
 0x2b8   : > { %p1027_p10 = scmp.lt.s32.totalorder %s1025_s15, %s1021_s9 }
 0x2b9   : > { %p1023_p7 = pnand %p1022_p4, %p1154_p5 }
 0x2ba   : > { %p1028_p11 = por %p1027_p10, %p1026_p9 }
 0x2bb   : > { %p1024_p8 = pneg %p1023_p7 }
 0x2bd   : > { %p1029_p12 = pnand %p1028_p11, %p1024_p8 }
 0x2bf   : > { %1032 = shalt.err (!%p1029_p12)
}
 0x2c0   : > { %959 = dma.vmem_to_hbm [thread:$0]  (%p1154_p5), %s875_s18, 256, %s1232_s21, %s860_s22  }
 0x2c1 PF: > { %p965_p13 = scmp.ge.s32.totalorder %s1067_s27, 2  ;;  %s886_s19 = sand.u32 1, %s1055_s24  }
 0x2c2   : > { %s887_s20 = scalar_lea.sflag [#allocation4], %s886_s19 }
 0x2c3   : > { %p962_p0 = pnand %p965_p13, %p1158_p6 }
 0x2c5   : > { %p963_p1 = pneg %p962_p0 }
 0x2c7   : > { %1050 = dma.done.wait (%p963_p1), %s887_s20, 256  }
 0x2c8   : > { %1052 = vsyncadd (%p963_p1), %s887_s20, 4294967040  ;;  %p17_p2 = scmp.ge.s32.totalorder %s1141_s30, 4   ;;  %s1279_s24 = smov %s1059_s25 }
 0x2c9   : > { %s1280_s25 = smov %s1063_s26  ;;  %s1281_s26 = smov %s1152_s10 }
 0x2ca   : > { %s1282_s27 = smov %s1141_s30  ;;  %19 = sbr.rel (!%p17_p2) target bundleno = 3 (0x3), region = 87 }
 0x2cf   :  { %892 = vsyncpa [#allocation4], 1 }
 0x2d0   :  { %894 = vsyncpa [#allocation4 + $0x1], 1 }

</bundles_post_ra>
